<compile_context>
chip_gen: v5e
topology: v5e:2x2
jax: 0.10.0
libtpu: 0.0.40
codegen_flags: <defaults>
</compile_context>

<pallas_src>
import jax
import jax.numpy as jnp
from jax import lax
from jax.experimental import pallas as pl
from jax.experimental.pallas import tpu as pltpu


def _round_up(x: int, m: int) -> int:
    return (x + m - 1) // m * m


def _make_cel_kernel(tolerance: float, neg_inv_batch: float,
                     batch_valid: int, b_tile: int):
    tol = float(tolerance)

    def kernel(preds_ref, times_ref, starts_ref, ends_ref, out_ref):
        c = pl.program_id(0)              # parallel slice (megacore / v7x 2-TC)
        i = pl.program_id(1)              # batch tile within the slice
        n_inner = pl.num_programs(1)

        @pl.when(i == 0)
        def _init():
            out_ref[...] = jnp.zeros_like(out_ref)

        preds = preds_ref[...].astype(jnp.float32)    # [n_bins, b_tile]
        times = times_ref[...].astype(jnp.float32)    # [1, b_tile]
        starts = starts_ref[...].astype(jnp.float32)  # [n_bins, 1]
        ends = ends_ref[...].astype(jnp.float32)      # [n_bins, 1]

        # discretize_times: (t > bin_start) & (t <= bin_end) -> [n_bins, b_tile]
        disc = jnp.logical_and(times > starts, times <= ends)

        # disc in {0,1}:  disc*log(p+tol) + (1-disc)*log(1-p+tol)
        #              == log(where(disc, p, 1-p) + tol)   (single EUP log)
        sel = jnp.where(disc, preds, 1.0 - preds)
        ce = jnp.log(sel + tol)                           # [n_bins, b_tile]

        # Mask padded batch lanes (batch was padded up to a tile multiple).
        lane = lax.broadcasted_iota(jnp.int32, (1, b_tile), 1)
        gidx = (c * n_inner + i) * b_tile + lane
        valid = (gidx < batch_valid).astype(jnp.float32)  # [1, b_tile]

        partial = jnp.sum(ce * valid)                     # scalar partial sum
        out_ref[...] = out_ref[...] + partial             # resident accumulator

        @pl.when(i == n_inner - 1)
        def _finalize():
            # negative mean over the (true) batch
            out_ref[...] = out_ref[...] * neg_inv_batch

    return kernel


def discrete_failure_time_cel(
    predictions: jax.Array,     # [B, n_bins + 1], any float dtype (cast in-kernel)
    event_times: jax.Array,     # [B]
    bin_boundaries: jax.Array,  # [n_bins + 1]
    tolerance: float = 1e-8,
    *,
    max_lane_tile: int = 8192,  # lanes (batch elems) per grid step; multiple of 128
    num_parallel: int = 2,      # leading "parallel" grid axis (both v7x TCs)
) -> jax.Array:
    b, total_cols = predictions.shape
    n_bins = int(bin_boundaries.shape[0]) - 1
    assert total_cols == n_bins + 1, "predictions must have n_bins + 1 columns"

    bin_starts = bin_boundaries[:-1].astype(jnp.float32).reshape(n_bins, 1)
    bin_ends = bin_boundaries[1:].astype(jnp.float32).reshape(n_bins, 1)

    # Fold the [:, :-1] drop into the transpose (single XLA copy, native dtype,
    # no f32 upcast in HBM).  Batch ends up on the 128-lane axis.
    preds_t = jnp.transpose(predictions[:, :n_bins])     # [n_bins, B]
    times = event_times.reshape(1, b)                    # [1, B]

    # Tile sizing: lane-dense tiles, padded batch so B_pad = num_parallel * tile * steps.
    lane = 128
    b_tile = min(int(max_lane_tile), _round_up(-(-b // num_parallel), lane))
    chunk = num_parallel * b_tile
    b_pad = _round_up(b, chunk)
    n_steps = b_pad // chunk

    if b_pad != b:
        preds_t = jnp.pad(preds_t, ((0, 0), (0, b_pad - b)))
        times = jnp.pad(times, ((0, 0), (0, b_pad - b)))

    kernel = _make_cel_kernel(float(tolerance), -1.0 / float(b), b, b_tile)

    out = pl.pallas_call(
        kernel,
        out_shape=jax.ShapeDtypeStruct((num_parallel, 8, 128), jnp.float32),
        grid=(num_parallel, n_steps),
        in_specs=[
            pl.BlockSpec((n_bins, b_tile), lambda c, i: (0, c * n_steps + i)),
            pl.BlockSpec((1, b_tile), lambda c, i: (0, c * n_steps + i)),
            pl.BlockSpec((n_bins, 1), lambda c, i: (0, 0)),
            pl.BlockSpec((n_bins, 1), lambda c, i: (0, 0)),
        ],
        # Each parallel slice owns its own full (8,128) accumulator tile
        # (unmasked stores, resident across the inner "arbitrary" axis).
        out_specs=pl.BlockSpec((1, 8, 128), lambda c, i: (c, 0, 0)),
        compiler_params=pltpu.CompilerParams(
            dimension_semantics=("parallel", "arbitrary")),
    )(preds_t, times, bin_starts, bin_ends)

    # Every element of each slice's tile holds that slice's (already -1/B scaled)
    # partial; summing the per-slice partials gives the loss.
    return jnp.sum(out[:, 0, 0])


if __name__ == "__main__":
    key = jax.random.PRNGKey(0)
    k1, k2 = jax.random.split(key)

    batch = 300          # not a multiple of 128 -> exercises padding + masking
    n_bins = 8           # bin_boundaries has n_bins + 1 = 9 entries

    bin_boundaries = jnp.linspace(0.0, 1.0, n_bins + 1, dtype=jnp.float32)

    logits = jax.random.normal(k1, (batch, n_bins + 1), dtype=jnp.float32)
    predictions = jax.nn.softmax(logits, axis=-1)
    event_times = jax.random.uniform(
        k2, (batch,), minval=0.05, maxval=0.95, dtype=jnp.float32
    )

    # Small lane tile so the (parallel, arbitrary) grid has multiple steps: (2, 2).
    loss = discrete_failure_time_cel(
        predictions, event_times, bin_boundaries, max_lane_tile=128
    )
    jax.block_until_ready(loss)

    # Pure-JAX reference (same math as the PyTorch module).
    bs_ = bin_boundaries[:-1]
    be_ = bin_boundaries[1:]
    t = event_times[:, None]
    disc = ((t > bs_) & (t <= be_)).astype(jnp.float32)
    p = predictions[:, :-1]
    ce = -jnp.sum(
        disc * jnp.log(p + 1e-8) + (1.0 - disc) * jnp.log(1.0 - p + 1e-8), axis=1
    )
    ref = jnp.mean(ce)

    assert jnp.allclose(loss, ref, rtol=1e-4, atol=1e-5), (loss, ref)
    print("KERNEL_OK")
</pallas_src>

<mosaic_0001>
module attributes {stable_mosaic.version = 11 : i64} {
  func.func @kernel(%arg0: i32, %arg1: i32, %arg2: memref<8x128xf32, #tpu.memory_space<vmem>>, %arg3: memref<1x128xf32, #tpu.memory_space<vmem>>, %arg4: memref<8x1xf32, #tpu.memory_space<vmem>>, %arg5: memref<8x1xf32, #tpu.memory_space<vmem>>, %arg6: memref<1x8x128xf32, #tpu.memory_space<vmem>>) attributes {dimension_semantics = [#tpu.dimension_semantics<parallel>, #tpu.dimension_semantics<arbitrary>], iteration_bounds = array<i64: 2, 2>, scalar_prefetch = 0 : i64, scratch_operands = 0 : i64, tpu.core_type = #tpu.core_type<tc>, window_params = [{transform_indices = @transform_0, window_bounds = array<i64: 8, 128>}, {transform_indices = @transform_1, window_bounds = array<i64: 1, 128>}, {pipeline_mode = #tpu.pipeline_mode<synchronous>, transform_indices = @transform_2, window_bounds = array<i64: 8, 1>}, {pipeline_mode = #tpu.pipeline_mode<synchronous>, transform_indices = @transform_3, window_bounds = array<i64: 8, 1>}, {transform_indices = @transform_4, window_bounds = array<i64: 1, 8, 128>}]} {
    %c0_i32 = arith.constant 0 : i32
    %0 = arith.cmpi eq, %arg1, %c0_i32 : i32
    %1 = arith.extui %0 : i1 to i32
    %c0_i32_0 = arith.constant 0 : i32
    %2 = arith.cmpi ne, %1, %c0_i32_0 : i32
    scf.if %2 {
      %cst_17 = arith.constant 0.000000e+00 : f32
      %43 = vector.broadcast %cst_17 : f32 to vector<1x8x128xf32>
      %c0_18 = arith.constant 0 : index
      %c0_19 = arith.constant 0 : index
      %c0_20 = arith.constant 0 : index
      %44 = vector.load %arg6[%c0_18, %c0_19, %c0_20] : memref<1x8x128xf32, #tpu.memory_space<vmem>>, vector<1x8x128xf32>
      tpu.vector_store %arg6[%c0_18, %c0_19, %c0_20], %43 {strides = array<i32>} : memref<1x8x128xf32, #tpu.memory_space<vmem>>, vector<1x8x128xf32>,
    } else {
    }
    %c0 = arith.constant 0 : index
    %c0_1 = arith.constant 0 : index
    %3 = vector.load %arg2[%c0, %c0_1] : memref<8x128xf32, #tpu.memory_space<vmem>>, vector<8x128xf32>
    %c0_2 = arith.constant 0 : index
    %c0_3 = arith.constant 0 : index
    %4 = vector.load %arg3[%c0_2, %c0_3] : memref<1x128xf32, #tpu.memory_space<vmem>>, vector<1x128xf32>
    %c0_4 = arith.constant 0 : index
    %c0_5 = arith.constant 0 : index
    %5 = vector.load %arg4[%c0_4, %c0_5] : memref<8x1xf32, #tpu.memory_space<vmem>>, vector<8x1xf32>
    %c0_6 = arith.constant 0 : index
    %c0_7 = arith.constant 0 : index
    %6 = vector.load %arg5[%c0_6, %c0_7] : memref<8x1xf32, #tpu.memory_space<vmem>>, vector<8x1xf32>
    %7 = vector.broadcast %4 : vector<1x128xf32> to vector<8x128xf32>
    %8 = vector.broadcast %5 : vector<8x1xf32> to vector<8x128xf32>
    %9 = arith.cmpf ogt, %7, %8 : vector<8x128xf32>
    %10 = vector.broadcast %4 : vector<1x128xf32> to vector<8x128xf32>
    %11 = vector.broadcast %6 : vector<8x1xf32> to vector<8x128xf32>
    %12 = arith.cmpf ole, %10, %11 : vector<8x128xf32>
    %13 = arith.andi %9, %12 : vector<8x128xi1>
    %cst = arith.constant 1.000000e+00 : f32
    %14 = vector.broadcast %cst : f32 to vector<8x128xf32>
    %15 = arith.subf %14, %3 : vector<8x128xf32>
    %16 = arith.select %13, %3, %15 : vector<8x128xi1>, vector<8x128xf32>
    %cst_8 = arith.constant 9.99999993E-9 : f32
    %17 = vector.broadcast %cst_8 : f32 to vector<8x128xf32>
    %18 = arith.addf %16, %17 : vector<8x128xf32>
    %19 = math.log %18 : vector<8x128xf32>
    %20 = tpu.iota {dimensions = array<i32: 1>} : vector<1x128xi32>
    %c2_i32 = arith.constant 2 : i32
    %21 = arith.muli %arg0, %c2_i32 : i32
    %22 = arith.addi %21, %arg1 : i32
    %c128_i32 = arith.constant 128 : i32
    %23 = arith.muli %22, %c128_i32 : i32
    %24 = vector.broadcast %23 : i32 to vector<1x128xi32>
    %25 = arith.addi %24, %20 : vector<1x128xi32>
    %c300_i32 = arith.constant 300 : i32
    %26 = vector.broadcast %c300_i32 : i32 to vector<1x128xi32>
    %27 = arith.cmpi slt, %25, %26 : vector<1x128xi32>
    %28 = arith.extui %27 : vector<1x128xi1> to vector<1x128xi32>
    %29 = arith.sitofp %28 : vector<1x128xi32> to vector<1x128xf32>
    %30 = vector.broadcast %29 : vector<1x128xf32> to vector<8x128xf32>
    %31 = arith.mulf %19, %30 : vector<8x128xf32>
    %32 = vector.shape_cast %31 : vector<8x128xf32> to vector<1x8x128xf32>
    %cst_9 = arith.constant dense<0.000000e+00> : vector<1xf32>
    %33 = vector.multi_reduction <add>, %32, %cst_9 [1, 2] : vector<1x8x128xf32> to vector<1xf32>
    %34 = vector.shape_cast %33 : vector<1xf32> to vector<1x1x1xf32>
    %35 = vector.extract %34[0, 0, 0] : f32 from vector<1x1x1xf32>
    %c0_10 = arith.constant 0 : index
    %c0_11 = arith.constant 0 : index
    %c0_12 = arith.constant 0 : index
    %36 = vector.load %arg6[%c0_10, %c0_11, %c0_12] : memref<1x8x128xf32, #tpu.memory_space<vmem>>, vector<1x8x128xf32>
    %37 = vector.broadcast %35 : f32 to vector<1x8x128xf32>
    %38 = arith.addf %36, %37 : vector<1x8x128xf32>
    %c0_13 = arith.constant 0 : index
    %c0_14 = arith.constant 0 : index
    %c0_15 = arith.constant 0 : index
    %39 = vector.load %arg6[%c0_13, %c0_14, %c0_15] : memref<1x8x128xf32, #tpu.memory_space<vmem>>, vector<1x8x128xf32>
    tpu.vector_store %arg6[%c0_13, %c0_14, %c0_15], %38 {strides = array<i32>} : memref<1x8x128xf32, #tpu.memory_space<vmem>>, vector<1x8x128xf32>,
    %c1_i32 = arith.constant 1 : i32
    %40 = arith.cmpi eq, %arg1, %c1_i32 : i32
    %41 = arith.extui %40 : i1 to i32
    %c0_i32_16 = arith.constant 0 : i32
    %42 = arith.cmpi ne, %41, %c0_i32_16 : i32
    scf.if %42 {
      %c0_17 = arith.constant 0 : index
      %c0_18 = arith.constant 0 : index
      %c0_19 = arith.constant 0 : index
      %43 = vector.load %arg6[%c0_17, %c0_18, %c0_19] : memref<1x8x128xf32, #tpu.memory_space<vmem>>, vector<1x8x128xf32>
      %cst_20 = arith.constant -0.00333333341 : f32
      %44 = vector.broadcast %cst_20 : f32 to vector<1x8x128xf32>
      %45 = arith.mulf %43, %44 : vector<1x8x128xf32>
      %c0_21 = arith.constant 0 : index
      %c0_22 = arith.constant 0 : index
      %c0_23 = arith.constant 0 : index
      %46 = vector.load %arg6[%c0_21, %c0_22, %c0_23] : memref<1x8x128xf32, #tpu.memory_space<vmem>>, vector<1x8x128xf32>
      tpu.vector_store %arg6[%c0_21, %c0_22, %c0_23], %45 {strides = array<i32>} : memref<1x8x128xf32, #tpu.memory_space<vmem>>, vector<1x8x128xf32>,
    } else {
    }
    return
  }
  func.func @transform_0(%arg0: i32, %arg1: i32) -> (i32, i32) {
    %c2_i32 = arith.constant 2 : i32
    %0 = arith.muli %arg0, %c2_i32 : i32
    %1 = arith.addi %0, %arg1 : i32
    %c0_i32 = arith.constant 0 : i32
    %c0_i32_0 = arith.constant 0 : i32
    return %c0_i32, %1 : i32, i32
  }
  func.func @transform_1(%arg0: i32, %arg1: i32) -> (i32, i32) {
    %c2_i32 = arith.constant 2 : i32
    %0 = arith.muli %arg0, %c2_i32 : i32
    %1 = arith.addi %0, %arg1 : i32
    %c0_i32 = arith.constant 0 : i32
    %c0_i32_0 = arith.constant 0 : i32
    return %c0_i32, %1 : i32, i32
  }
  func.func @transform_2(%arg0: i32, %arg1: i32) -> (i32, i32) {
    %c0_i32 = arith.constant 0 : i32
    %c0_i32_0 = arith.constant 0 : i32
    %c0_i32_1 = arith.constant 0 : i32
    return %c0_i32, %c0_i32_0 : i32, i32
  }
  func.func @transform_3(%arg0: i32, %arg1: i32) -> (i32, i32) {
    %c0_i32 = arith.constant 0 : i32
    %c0_i32_0 = arith.constant 0 : i32
    %c0_i32_1 = arith.constant 0 : i32
    return %c0_i32, %c0_i32_0 : i32, i32
  }
  func.func @transform_4(%arg0: i32, %arg1: i32) -> (i32, i32, i32) {
    %c0_i32 = arith.constant 0 : i32
    %c0_i32_0 = arith.constant 0 : i32
    %c0_i32_1 = arith.constant 0 : i32
    return %arg0, %c0_i32, %c0_i32_0 : i32, i32, i32
  }
}

</mosaic_0001>

<bundles_post_ra>
// kernel: tpu_custom_call.1
= control target key start
LH: loop header
LB: loop body
LE: loop exit
PB: predicated region body
PF: predicated region fallthrough
CT: control target
= control target key end

     0   :  { %9 = vsyncpa [#allocation3], 0  ;;  %s946_s0 = inlined_call_operand.hbm [shape: f32[8,512], index: 0, kind: input, shape index: {}]   ;;  %s947_s1 = inlined_call_operand.vmem [shape: f32[1,512], index: 1, kind: input, shape index: {}]   ;;  %s948_s2 = inlined_call_operand.vmem [shape: f32[8,1], index: 2, kind: input, shape index: {}]   ;;  %s949_s3 = inlined_call_operand.vmem [shape: f32[8,1], index: 3, kind: input, shape index: {}]   ;;  %s950_s4 = inlined_call_operand.hbm [shape: f32[2,8,128], index: 4, kind: output, shape index: {}]  }
   0x1   :  { %11 = vsyncpa [#allocation3 + $0x1], 0 }
   0x2   :  { %12 = vsyncpa [#allocation4], 0 }
   0x3   :  { %14 = vsyncpa [#allocation4 + $0x1], 0  ;;  %s749_s15 = smov 0   ;;  %s751_s16 = smov 0  }
   0x4   :  { %s753_s17 = smov 0   ;;  %s755_s18 = smov 0  }
   0x5   :  { %s757_s19 = smov 0   ;;  %s759_s20 = smov 0  }
   0x6   :  { %s761_s21 = smov 0   ;;  %s763_s22 = smov 0  }
   0x7   :  { %s765_s23 = smov 0   ;;  %s767_s24 = smov 0  }
   0x8   :  { %s769_s25 = smov 0  }
   0x9 LB: > { %955 = sst [smem:[#allocation8_spill]] %s711_s23  ;;  %s432_s26 = sadd.s32 4294967295, %s719_s25   ;;  %s719_s25 = sphi %s769_s25, %s20_s25   ;;  %s715_s24 = sphi %s767_s24, %s968_s24   ;;  %s711_s23 = sphi %s765_s23, %s967_s23   ;;  %s707_s22 = sphi %s763_s22, %s966_s22   ;;  %s703_s21 = sphi %s761_s21, %s965_s21   ;;  %s699_s20 = sphi %s759_s20, %s974_s20   ;;  %s695_s19 = sphi %s757_s19, %s973_s19   ;;  %s691_s18 = sphi %s755_s18, %s972_s18   ;;  %s687_s17 = sphi %s753_s17, %s971_s17   ;;  %s683_s16 = sphi %s751_s16, %s970_s16   ;;  %s679_s15 = sphi %s749_s15, %s969_s15  }
   0xa   : > { %956 = sst [smem:[#allocation9_spill]] %s715_s24  ;;  %s433_s27 = sadd.s32 4294967294, %s719_s25  }
   0xb   : > { %s29_s28 = sadd.s32 1, %s711_s23  ;;  %s32_s29 = sadd.s32 1, %s715_s24 }
   0xc   : > { %p30_p0 = scmp.ge.s32.totalorder %s29_s28, 2  ;;  %s434_s30 = sshll.u32 %s715_s24, 1 }
   0xd   : > { %s808_s5 = sadd.s32 %s711_s23, %s434_s30  ;;  %s43_s6 = sadd.s32 1, %s699_s20 }
   0xe   : > { %s976_s28 = smov (%p30_p0, %s29_s28), 0  ;;  %s978_s29 = smov (!%p30_p0, %s32_s29), %s715_s24 }
   0xf   : > { %957 = sst [smem:[#allocation10_spill]] %s976_s28  ;;  %p50_p1 = scmp.ne.s32.totalorder %s699_s20, %s695_s19 }
  0x10   : > { %p51_p2 = scmp.eq.s32.totalorder %s719_s25, 0  ;;  %p34_p3 = scmp.ge.s32.totalorder %s978_s29, 2 }
  0x11   : > { %p56_p4 = scmp.ne.s32.totalorder %s695_s19, %s691_s18  ;;  %p57_p6 = scmp.eq.s32.totalorder %s432_s26, 0 }
  0x12   : > { %p818_p5 = por %p51_p2, %p50_p1  ;;  %s980_s29 = smov (%p34_p3, %s978_s29), 0 }
  0x13   : > { %959 = sst [smem:[#allocation11_spill]] %s980_s29  ;;  %p824_p7 = por %p57_p6, %p56_p4 }
  0x14   : > { %s141_s9 = sadd.s32 1, %s687_s17  ;;  %s435_s10 = sshll.u32 %s980_s29, 1 }
  0x15   : > { %s138_s11 = ssub.s32 %s715_s24, %s980_s29  ;;  %s39_s12 = sadd.s32 %s435_s10, %s976_s28 }
  0x16   : > { %p139_p8 = scmp.eq.s32.totalorder %s138_s11, 0  ;;  %s40_s13 = ssub.s32 %s808_s5, %s39_s12 }
  0x17   : > { %p151_p9 = scmp.ne.s32.totalorder %s687_s17, %s683_s16  ;;  %p41_p10 = scmp.eq.s32.totalorder %s40_s13, 0 }
  0x18   : > { %p152_p11 = scmp.eq.s32.totalorder %s432_s26, 3  ;;  %p157_p13 = scmp.ne.s32.totalorder %s683_s16, %s679_s15 }
  0x19   : > { %s837_s14 = scalar_select %p139_p8, %s687_s17, %s141_s9  }
  0x1a   : > { %s840_s18 = scalar_select %p41_p10, %s699_s20, %s43_s6  }
  0x1b   : > { %p842_p12 = por %p152_p11, %p151_p9  ;;  %p158_p0 = scmp.eq.s32.totalorder %s433_s27, 3 }
  0x1c   : > { %961 = sst [smem:[#allocation12_spill]] %s840_s18  ;;  %p470_p1 = scmp.lt.s32.totalorder %s719_s25, 4 }
  0x1d   : > { %s184_s10 = sand.u32 1, %s699_s20   ;;  %p852_p2 = por %p158_p0, %p157_p13 }
  0x1e   : > { %s440_s26 = sshll.u32 %s184_s10, 3  ;;  %s442_s9 = sshll.u32 %s808_s5, 3 }
  0x1f   : > { %s194_s13 = scalar_lea.hbm %s946_s0, %s442_s9  ;;  %s188_s28 = scalar_lea.vmem [#allocation2], %s440_s26 }
  0x20   : > { %s196_s29 = sshll.u32 %s194_s13, 4  ;;  %s198_s24 = sshll.u32 %s188_s28, 4  ;;  %s197_s29 = int_to_ptr.hbm [resolvable:$true] %s196_s29  ;;  %s199_s24 = int_to_ptr.vmem [resolvable:$true] %s198_s24 }
  0x21   : > { %p463_p3 = pnand %p470_p1, %p818_p5  ;;  %p443_p4 = scmp.ge.s32.totalorder %s719_s25, 1 }
  0x22   : > { %p213_p6 = scmp.lt.s32.totalorder %s719_s25, 5  ;;  %s185_s27 = scalar_lea.sflag [#allocation3], %s184_s10 }
  0x23   : > { %465 = dma.hbm_to_vmem [thread:$0]  (!%p463_p3), %s197_s29, 128, %s199_s24, %s185_s27  }
  0x24   : > { %p214_p8 = pnand %p443_p4, %p213_p6 }
  0x25   : > { %s219_s5 = sand.u32 (!%p214_p8), 1, %s695_s19  }
  0x26   : > { %217 = sbr.rel (%p214_p8) target bundleno = 404 (0x194), region = 36  ;;  %s444_s23 = sshll.u32 (!%p214_p8), %s219_s5, 3 }
  0x27   : > { %s220_s18 = scalar_lea.sflag (!%p214_p8), [#allocation3], %s219_s5  ;;  %s223_s12 = scalar_lea.vmem (!%p214_p8), [#allocation2], %s444_s23 }
  0x2b   : > { %670 = dma.done.wait (%p824_p7), %s220_s18, 128  }
  0x2c   : > { %672 = vsyncadd (%p824_p7), %s220_s18, 4294967168  ;;  %s251_s28 = sand.u32 1, %s683_s16   ;;  %s446_s7 = sshll.u32 %s707_s22, 1 }
  0x2d   : > { %s445_s24 = sshll.u32 %s251_s28, 3  ;;  %s257_s29 = sadd.s32 %s703_s21, %s446_s7 }
  0x2e   : > { %p258_p5 = scmp.lt.s32.totalorder %s257_s29, 3  ;;  %s877_s6 = scalar_lea.vmem [#allocation5], %s445_s24 }
  0x2f   : > { %p447_p9 = scmp.ne.s32.totalorder %s703_s21, 0 }
  0x30   : > { %s259_s10 = scalar_select %p258_p5, %s257_s29, 3 }
  0x31   : > { %266 = sbr.rel (%p447_p9) target bundleno = 56 (0x38), region = 44 }
  0x32   : > { %s260_s23 = scalar_lea.vmem %s947_s1, %s259_s10 }
  0x36   : > { %v721_v0 = vmov 0.0  }
  0x37   : > { %267 = vst [vmem:[%s877_s6] sm:$0xff] %v721_v0 }
  0x38 PF: > { %v270_v1 = vld [vmem:[%s948_s2] sm:$0xff]  ;;  %v722_v2 = vmov 0   ;;  %v293_v7 = vlaneseq  ;;  %s449_s5 = sshll.u32 %s257_s29, 7  ;;  %v723_v16 = vmov 0.0   ;;  %p451_p7 = scmp.ne.s32.totalorder %s703_s21, 1 }
  0x39   : > { %563 = vset.pattern.permute.xlu0 %v722_v2  ;;  %v271_v3 = vld [vmem:[%s949_s3] sm:$0xff]  ;;  %v298_v11 = vstv %s449_s5 }
  0x3a   : > { %277 = vperm.xlu0 %563, %v270_v1   ;;  %v268_v5 = vld [vmem:[%s223_s12] sm:$0xff]  ;;  %v294_v10 = vand.u32 127, %v293_v7 }
  0x3b   : > { %v564_v6 = vld [vmem:[%s260_s23] ss:$0 sm:$0xff]  ;;  %v288_v8 = vsub.f32 1.0, %v268_v5 }
  0x3c   : > { %v299_v14 = vadd.s32 %v298_v11, %v294_v10 }
  0x3e   : > { %vm300_vm3 = vcmp.lt.s32.totalorder %v299_v14, 300  ;;  %v313_v27 = vld [vmem:[%s877_s6] sm:$0xff] }
  0x3f   : > { %v450_v17 = vsel %vm300_vm3, 1.0, %v723_v16 }
  0x42   : > { %283 = vperm.xlu0 %563, %v271_v3  }
  0xac   : > { %v278_v4 = vpop.permute.xlu0 %277 }
  0xad   : > { %vm280_vm0 = vcmp.gt.f32.partialorder %v564_v6, %v278_v4 }
  0xb4   : > { %v284_v9 = vpop.permute.xlu0 %283 }
  0xb5   : > { %vm286_vm1 = vcmp.le.f32.partialorder %v564_v6, %v284_v9 }
  0xb6   : > { %vm287_vm2 = vmand %vm280_vm0, %vm286_vm1 }
  0xb7   : > { %v289_v12 = vsel %vm287_vm2, %v268_v5, %v288_v8 }
  0xb8   : > { %v290_v13 = vadd.f32 1e-08, %v289_v12 }
  0xba   : > { %565 = vlog2.f32 %v290_v13 }
  0xc0   : > { %v566_v15 = vpop.eup %565 }
  0xc1   : > { %v292_v18 = vmul.f32 0.6931472, %v566_v15 }
  0xc3   : > { %v303_v19 = vmul.f32 %v450_v17, %v292_v18 }
  0xc5   : > { %304 = vadd.xlane.f32.xlu1 %v303_v19 }
 0x138   : > { %v305_v20 = vpop.xlane.xlu1 %304 }
 0x139   : > { %v306_v21 = vrot.slane %v305_v20, 4 }
 0x13b   : > { %v307_v22 = vadd.f32 %v306_v21, %v305_v20 }
 0x13d   : > { %v308_v23 = vrot.slane %v307_v22, 2 }
 0x13f   : > { %v309_v24 = vadd.f32 %v308_v23, %v307_v22 }
 0x141   : > { %v310_v25 = vrot.slane %v309_v24, 1 }
 0x143   : > { %v311_v26 = vadd.f32 %v310_v25, %v309_v24 }
 0x145   : > { %456 = vpush %v311_v26 }
 0x176   : > { %s457_s12 = spop %456  ;;  %320 = sbr.rel (%p451_p7) target bundleno = 389 (0x185), region = 48 }
 0x177   : > { %v314_v28 = vstv %s457_s12 }
 0x178   : > { %v315_v29 = vadd.f32 %v314_v28, %v313_v27 }
 0x17a   : > { %316 = vst [vmem:[%s877_s6] sm:$0xff] %v315_v29 }
 0x181   : > { %v321_v30 = vld [vmem:[%s877_s6] sm:$0xff] }
 0x182   : > { %v322_v31 = vmul.f32 -0.0033333334, %v321_v30 }
 0x184   : > { %323 = vst [vmem:[%s877_s6] sm:$0xff] %v322_v31 }
 0x185 PF: > { %s453_s7 = sshll.u32 %s707_s22, 3  ;;  %s337_s26 = sshll.u32 %s877_s6, 4  ;;  %s338_s26 = int_to_ptr.vmem [resolvable:$true] %s337_s26 }
 0x186   : > { %s335_s10 = scalar_lea.hbm %s950_s4, %s453_s7  ;;  %s325_s21 = scalar_lea.sflag [#allocation4], %s251_s28 }
 0x187   : > { %s339_s9 = sshll.u32 %s335_s10, 4  ;;  %s617_s22 = scalar_lea.hbm %s950_s4, 16  ;;  %s340_s9 = int_to_ptr.hbm [resolvable:$true] %s339_s9 }
 0x188   : > { %s611_s23 = sshra.s32 %s340_s9, 4  ;;  %s612_s23 = int_to_ptr.hbm [resolvable:$true] %s611_s23 }
 0x189   : > { %s613_s8 = scalar_lea.hbm %s612_s23, 8  ;;  %p618_p0 = scmp.lt.s32.totalorder %s612_s23, %s950_s4 }
 0x18a   : > { %p614_p10 = scmp.ne.s32.totalorder %s612_s23, %s613_s8  ;;  %p619_p1 = scmp.lt.s32.totalorder %s617_s22, %s613_s8 }
 0x18c   : > { %p615_p11 = pnand %p614_p10, %p842_p12  ;;  %p620_p3 = por %p619_p1, %p618_p0 }
 0x18e   : > { %p616_p13 = pneg %p615_p11 }
 0x190   : > { %p621_p4 = pnand %p620_p3, %p616_p13 }
 0x192   : > { %624 = shalt.err (!%p621_p4)
}
 0x193   : > { %460 = dma.vmem_to_hbm [thread:$0]  (%p842_p12), %s338_s26, 128, %s340_s9, %s325_s21  }
 0x194 PF: > { %p471_p6 = scmp.ge.s32.totalorder %s719_s25, 2  ;;  %s351_s28 = sand.u32 1, %s679_s15  }
 0x195   : > { %s352_s6 = scalar_lea.sflag [#allocation4], %s351_s28 }
 0x196   : > { %p467_p8 = pnand %p471_p6, %p852_p2 }
 0x198   : > { %p468_p5 = pneg %p467_p8 }
 0x19a   : > { %674 = dma.done.wait (%p468_p5), %s352_s6, 128  }
 0x19b   : > { %676 = vsyncadd (%p468_p5), %s352_s6, 4294967168  ;;  %s20_s25 = sadd.s32 1, %s719_s25   ;;  %s964_s30 = sld [smem:[#allocation12_spill]] }
 0x19c   : > { %p17_p9 = scmp.ge.s32.totalorder %s20_s25, 6   ;;  %s965_s21 = sld [smem:[#allocation8_spill]] }
 0x19d   : > { %s966_s22 = sld [smem:[#allocation9_spill]]  ;;  %s969_s15 = smov %s683_s16 }
 0x19e   : > { %s967_s23 = sld [smem:[#allocation10_spill]]  ;;  %s970_s16 = smov %s687_s17 }
 0x19f   : > { %s968_s24 = sld [smem:[#allocation11_spill]]  ;;  %s971_s17 = smov %s837_s14 }
 0x1a0   : > { %s972_s18 = smov %s695_s19  ;;  %s973_s19 = smov %s699_s20 }
 0x1a1   : > { %s974_s20 = smov %s964_s30  ;;  %19 = sbr.rel (!%p17_p9) target bundleno = 9 (0x9), region = 92 }
 0x1a6   :  { %358 = vsyncpa [#allocation3], 1 }
 0x1a7   :  { %360 = vsyncpa [#allocation3 + $0x1], 1 }
 0x1a8   :  { %361 = vsyncpa [#allocation4], 1 }
 0x1a9   :  { %363 = vsyncpa [#allocation4 + $0x1], 1 }

</bundles_post_ra>
